<compile_context>
chip_gen: v6e
topology: v6e:2x2x1
jax: 0.10.0
libtpu: 0.0.40
codegen_flags: <defaults>
</compile_context>

<pallas_src>
import functools

import jax
import jax.numpy as jnp
from jax.experimental import pallas as pl
from jax.experimental.pallas import tpu as pltpu


# ------------------------- kernel ------------------------------------------

def _encoder_seq_kernel(tok_ref, emb_row_ref, h0_ref, wih_ref, whh_ref, bi_ref, bhn_ref,
                        out_ref, h_ref, *, n_layers, hp):
    """One grid step == one EncoderRNN.forward call (embed token, apply GRU n_layers times).

    tok_ref:     (T,)        int32 tokens in SMEM (scalar prefetch; only used by index_maps)
    emb_row_ref: (1, 1, Hp)  the embedding row for this step's token (gathered by BlockSpec)
    h0_ref:      (1, Hp)     initial hidden state (read at t == 0 only)
    wih_ref:     (Hp, 3Hp)   [Wir^T | Wiz^T | Win^T], lane-padded per gate, bf16
    whh_ref:     (Hp, 3Hp)   [Whr^T | Whz^T | Whn^T], lane-padded per gate, bf16
    bi_ref:      (1, 3Hp)    [b_ir+b_hr | b_iz+b_hz | b_in], f32
    bhn_ref:     (1, Hp)     b_hn (kept separate: it sits inside the r-gated term), f32
    out_ref:     (1, 1, Hp)  per-step output (== hidden after the layer loop)
    h_ref:       (1, Hp)     VMEM scratch carrying the hidden state across grid steps
    """
    del tok_ref  # token only drives the embedding-row DMA via the index_map
    t = pl.program_id(0)

    @pl.when(t == 0)
    def _():
        h_ref[...] = h0_ref[...]

    x0 = emb_row_ref[...].reshape(1, hp).astype(jnp.float32)
    h = h_ref[...]

    wih = wih_ref[...]
    whh = whh_ref[...]
    bi = bi_ref[...]
    bhn = bhn_ref[...]

    def gru_step(x, h):
        # bf16 MXU inputs, f32 accumulation; gate elementwise math in f32 (v5e has no bf16 VPU/EUP).
        gi = jnp.dot(x.astype(wih.dtype), wih, preferred_element_type=jnp.float32) + bi  # (1, 3Hp)
        gh = jnp.dot(h.astype(whh.dtype), whh, preferred_element_type=jnp.float32)       # (1, 3Hp)
        r = jax.nn.sigmoid(gi[:, :hp] + gh[:, :hp])
        z = jax.nn.sigmoid(gi[:, hp:2 * hp] + gh[:, hp:2 * hp])
        n = jnp.tanh(gi[:, 2 * hp:] + r * (gh[:, 2 * hp:] + bhn))
        return (1.0 - z) * n + z * h

    def body(_, carry):
        x, h = carry
        h_new = gru_step(x, h)
        return (h_new, h_new)  # single-step, single-layer GRU: output == new hidden

    x_final, h_final = jax.lax.fori_loop(0, n_layers, body, (x0, h), unroll=True)

    h_ref[...] = h_final
    out_ref[...] = x_final.reshape(1, 1, hp).astype(out_ref.dtype)


# ------------------------- wrappers -----------------------------------------

def encoder_rnn_forward_seq(tokens, hidden, packed, n_layers=1):
    """Run EncoderRNN.forward for every token in `tokens`, carrying the hidden state, in ONE
    pallas_call.  Returns (outputs (T,1,H), final hidden (1,1,H))."""
    emb = packed["embedding"]                       # (V, 1, Hp)
    V, _, Hp = emb.shape
    H = packed["hidden_size"]

    tokens = jnp.clip(jnp.asarray(tokens, jnp.int32).reshape(-1), 0, V - 1)  # no OOB DMA
    T = tokens.shape[0]
    h0 = jnp.pad(hidden.reshape(1, H).astype(jnp.float32), ((0, 0), (0, Hp - H)))

    kernel = functools.partial(_encoder_seq_kernel, n_layers=n_layers, hp=Hp)

    grid_spec = pltpu.PrefetchScalarGridSpec(
        num_scalar_prefetch=1,
        grid=(T,),
        in_specs=[
            # data-dependent embedding-row gather: only (1,1,Hp) per step goes HBM->VMEM
            pl.BlockSpec((1, 1, Hp), lambda t, toks: (toks[t], 0, 0)),
            pl.BlockSpec((1, Hp), lambda t, toks: (0, 0)),            # h0
            pl.BlockSpec((Hp, 3 * Hp), lambda t, toks: (0, 0)),        # wih_cat (resident)
            pl.BlockSpec((Hp, 3 * Hp), lambda t, toks: (0, 0)),        # whh_cat (resident)
            pl.BlockSpec((1, 3 * Hp), lambda t, toks: (0, 0)),         # bias_i
            pl.BlockSpec((1, Hp), lambda t, toks: (0, 0)),             # bias_hn
        ],
        out_specs=pl.BlockSpec((1, 1, Hp), lambda t, toks: (t, 0, 0)),
        scratch_shapes=[pltpu.VMEM((1, Hp), jnp.float32)],             # hidden-state carry
    )

    wbytes = (packed["wih_cat"].size + packed["whh_cat"].size) * packed["wih_cat"].dtype.itemsize
    vmem_limit = int(min(max(6 * wbytes + (4 << 20), 32 << 20), 64 << 20))

    out = pl.pallas_call(
        kernel,
        grid_spec=grid_spec,
        out_shape=jax.ShapeDtypeStruct((T, 1, Hp), jnp.float32),
        compiler_params=pltpu.CompilerParams(
            dimension_semantics=("arbitrary",),   # time axis carries the hidden state
            vmem_limit_bytes=vmem_limit),
    )(tokens, emb, h0, packed["wih_cat"], packed["whh_cat"],
      packed["bias_i"], packed["bias_hn"])

    outputs = out[:, :, :H]                         # (T, 1, H), drop lane padding
    hidden_final = outputs[-1].reshape(1, 1, H)     # output == hidden for this module
    return outputs, hidden_final


def encoder_rnn_forward(token, hidden, packed, n_layers=1):
    """Exact single-call EncoderRNN.forward: one token -> (output, hidden), both (1,1,H)."""
    tok = jnp.asarray(token, jnp.int32).reshape(1)
    outputs, hidden_final = encoder_rnn_forward_seq(tok, hidden, packed, n_layers=n_layers)
    out = outputs.reshape(1, 1, -1)
    return out, hidden_final


# ------------------------- parameters ---------------------------------------

def init_raw_params(key, input_size, hidden_size):
    """PyTorch-convention parameters (for the reference model)."""
    k_emb, k_wih, k_whh, k_bih, k_bhh = jax.random.split(key, 5)
    bound = 1.0 / jnp.sqrt(hidden_size)
    return {
        "embedding": jax.random.normal(k_emb, (input_size, hidden_size), jnp.float32),
        "weight_ih": jax.random.uniform(k_wih, (3, hidden_size, hidden_size),
                                        jnp.float32, -bound, bound),
        "weight_hh": jax.random.uniform(k_whh, (3, hidden_size, hidden_size),
                                        jnp.float32, -bound, bound),
        "bias_ih": jax.random.uniform(k_bih, (3, hidden_size), jnp.float32, -bound, bound),
        "bias_hh": jax.random.uniform(k_bhh, (3, hidden_size), jnp.float32, -bound, bound),
    }


def pack_params(raw, weight_dtype=jnp.bfloat16):
    """One-time repack: transpose, lane-pad each gate to a 128 boundary, gate-concat weights,
    pre-fold r/z biases, store weights/embedding in bf16."""
    V, H = raw["embedding"].shape
    Hp = ((H + 127) // 128) * 128

    def pad_gate_w(w):                       # (H_out, H_in) -> (Hp_in, Hp_out), transposed
        return jnp.pad(w.T, ((0, Hp - H), (0, Hp - H)))

    def pad_vec(v):
        return jnp.pad(v, (0, Hp - H))

    wih_cat = jnp.concatenate([pad_gate_w(raw["weight_ih"][g]) for g in range(3)],
                              axis=1).astype(weight_dtype)              # (Hp, 3Hp)
    whh_cat = jnp.concatenate([pad_gate_w(raw["weight_hh"][g]) for g in range(3)],
                              axis=1).astype(weight_dtype)              # (Hp, 3Hp)
    bias_i = jnp.concatenate([pad_vec(raw["bias_ih"][0] + raw["bias_hh"][0]),
                              pad_vec(raw["bias_ih"][1] + raw["bias_hh"][1]),
                              pad_vec(raw["bias_ih"][2])]).reshape(1, 3 * Hp)
    bias_hn = pad_vec(raw["bias_hh"][2]).reshape(1, Hp)
    embedding = jnp.pad(raw["embedding"], ((0, 0), (0, Hp - H))) \
                   .astype(weight_dtype).reshape(V, 1, Hp)
    return {
        "embedding": embedding,
        "wih_cat": wih_cat,
        "whh_cat": whh_cat,
        "bias_i": bias_i.astype(jnp.float32),
        "bias_hn": bias_hn.astype(jnp.float32),
        "hidden_size": H,
    }


# ------------------------- pure-JAX references -------------------------------

def gru_cell_ref(x, h, raw):
    H = x.shape[-1]
    def lin(v, W, b):
        return v @ W.T + b.reshape(1, H)
    i_r = lin(x, raw["weight_ih"][0], raw["bias_ih"][0])
    i_z = lin(x, raw["weight_ih"][1], raw["bias_ih"][1])
    i_n = lin(x, raw["weight_ih"][2], raw["bias_ih"][2])
    h_r = lin(h, raw["weight_hh"][0], raw["bias_hh"][0])
    h_z = lin(h, raw["weight_hh"][1], raw["bias_hh"][1])
    h_n = lin(h, raw["weight_hh"][2], raw["bias_hh"][2])
    r = jax.nn.sigmoid(i_r + h_r)
    z = jax.nn.sigmoid(i_z + h_z)
    n = jnp.tanh(i_n + r * h_n)
    return (1.0 - z) * n + z * h


def encoder_rnn_ref(tokens, hidden0, raw, n_layers):
    """Full-f32 PyTorch-convention reference over the token sequence."""
    H = hidden0.shape[-1]
    h = hidden0.reshape(1, H)
    outs = []
    for tok in tokens:
        x = raw["embedding"][tok].reshape(1, H)
        for _ in range(n_layers):
            h = gru_cell_ref(x, h, raw)
            x = h
        outs.append(x)
    return jnp.stack(outs), h.reshape(1, 1, H)


def encoder_rnn_ref_mixed(tokens, hidden0, packed, n_layers):
    """Pure-JAX mirror of the kernel's mixed-precision math (bf16 matmul inputs, f32 gates)."""
    H = packed["hidden_size"]
    Hp = packed["wih_cat"].shape[0]
    emb = packed["embedding"].reshape(-1, Hp)
    wih, whh = packed["wih_cat"], packed["whh_cat"]
    bi, bhn = packed["bias_i"], packed["bias_hn"]
    h = jnp.pad(hidden0.reshape(1, H).astype(jnp.float32), ((0, 0), (0, Hp - H)))
    outs = []
    for tok in tokens:
        x = emb[tok].reshape(1, Hp).astype(jnp.float32)
        for _ in range(n_layers):
            gi = jnp.dot(x.astype(wih.dtype), wih, preferred_element_type=jnp.float32) + bi
            gh = jnp.dot(h.astype(whh.dtype), whh, preferred_element_type=jnp.float32)
            r = jax.nn.sigmoid(gi[:, :Hp] + gh[:, :Hp])
            z = jax.nn.sigmoid(gi[:, Hp:2 * Hp] + gh[:, Hp:2 * Hp])
            n = jnp.tanh(gi[:, 2 * Hp:] + r * (gh[:, 2 * Hp:] + bhn))
            h = (1.0 - z) * n + z * h
            x = h
        outs.append(x[:, :H])
    return jnp.stack(outs), h[:, :H].reshape(1, 1, H)


# ------------------------- demo / checks ------------------------------------

if __name__ == "__main__":
    input_size = 10      # vocab size
    hidden_size = 32
    n_layers = 2         # exercise the fused in-kernel layer loop
    seq_len = 5          # exercise the fused time loop (grid axis)

    key = jax.random.PRNGKey(0)
    k_params, k_tok = jax.random.split(key)
    raw = init_raw_params(k_params, input_size, hidden_size)
    packed = pack_params(raw)

    tokens = jax.random.randint(k_tok, (seq_len,), 0, input_size, dtype=jnp.int32)
    hidden0 = jnp.zeros((1, 1, hidden_size), jnp.float32)   # initHidden()

    # Fused whole-sequence forward: T EncoderRNN.forward steps in ONE pallas_call.
    outputs, hidden = encoder_rnn_forward_seq(tokens, hidden0, packed, n_layers=n_layers)
    outputs = jax.block_until_ready(outputs)
    hidden = jax.block_until_ready(hidden)
    assert outputs.shape == (seq_len, 1, hidden_size)
    assert hidden.shape == (1, 1, hidden_size)

    # tight check vs a pure-JAX mirror of the kernel's mixed-precision math
    out_mix, hid_mix = encoder_rnn_ref_mixed(tokens, hidden0, packed, n_layers)
    assert jnp.allclose(outputs, out_mix, atol=1e-3), "mismatch vs matched mixed-precision ref"
    assert jnp.allclose(hidden, hid_mix, atol=1e-3), "hidden mismatch vs mixed-precision ref"

    # semantic check vs the full-f32 PyTorch-convention reference (bf16 weights => loose tol)
    out_f32, hid_f32 = encoder_rnn_ref(tokens, hidden0, raw, n_layers)
    assert jnp.allclose(outputs, out_f32, atol=5e-2), "mismatch vs f32 PyTorch-convention ref"
    assert jnp.allclose(hidden, hid_f32, atol=5e-2), "hidden mismatch vs f32 reference"
    assert jnp.allclose(hidden, outputs[-1].reshape(1, 1, hidden_size)), \
        "final hidden must equal last output for this module"

    # single-token path (matches EncoderRNN.forward exactly), module-default n_layers=1
    out1, hid1 = encoder_rnn_forward(tokens[0], hidden0, packed, n_layers=1)
    out1 = jax.block_until_ready(out1)
    hid1 = jax.block_until_ready(hid1)
    out1_ref, hid1_ref = encoder_rnn_ref(tokens[:1], hidden0, raw, 1)
    assert jnp.allclose(out1, out1_ref[0].reshape(1, 1, hidden_size), atol=5e-2)
    assert jnp.allclose(hid1, hid1_ref, atol=5e-2)
    assert jnp.allclose(out1, hid1), "output must equal hidden for seq_len=1"

    print("KERNEL_OK")
</pallas_src>

<mosaic_0001>
module attributes {stable_mosaic.version = 11 : i64} {
  func.func @_encoder_seq_kernel(%arg0: i32, %arg1: memref<5xi32, #tpu.memory_space<smem>>, %arg2: memref<1x1x128xbf16, #tpu.memory_space<vmem>>, %arg3: memref<1x128xf32, #tpu.memory_space<vmem>>, %arg4: memref<128x384xbf16, #tpu.memory_space<vmem>>, %arg5: memref<128x384xbf16, #tpu.memory_space<vmem>>, %arg6: memref<1x384xf32, #tpu.memory_space<vmem>>, %arg7: memref<1x128xf32, #tpu.memory_space<vmem>>, %arg8: memref<1x1x128xf32, #tpu.memory_space<vmem>>, %arg9: memref<1x128xf32, #tpu.memory_space<vmem>>) attributes {dimension_semantics = [#tpu.dimension_semantics<arbitrary>], iteration_bounds = array<i64: 5>, scalar_prefetch = 1 : i64, scratch_operands = 1 : i64, tpu.core_type = #tpu.core_type<tc>, window_params = [{transform_indices = @transform_0, window_bounds = array<i64: 1, 1, 128>}, {pipeline_mode = #tpu.pipeline_mode<synchronous>, transform_indices = @transform_1, window_bounds = array<i64: 1, 128>}, {pipeline_mode = #tpu.pipeline_mode<synchronous>, transform_indices = @transform_2, window_bounds = array<i64: 128, 384>}, {pipeline_mode = #tpu.pipeline_mode<synchronous>, transform_indices = @transform_3, window_bounds = array<i64: 128, 384>}, {pipeline_mode = #tpu.pipeline_mode<synchronous>, transform_indices = @transform_4, window_bounds = array<i64: 1, 384>}, {pipeline_mode = #tpu.pipeline_mode<synchronous>, transform_indices = @transform_5, window_bounds = array<i64: 1, 128>}, {transform_indices = @transform_6, window_bounds = array<i64: 1, 1, 128>}]} {
    %c0_i32 = arith.constant 0 : i32
    %0 = arith.cmpi eq, %arg0, %c0_i32 : i32
    %1 = arith.extui %0 : i1 to i32
    %c0_i32_0 = arith.constant 0 : i32
    %2 = arith.cmpi ne, %1, %c0_i32_0 : i32
    scf.if %2 {
      %c0_28 = arith.constant 0 : index
      %c0_29 = arith.constant 0 : index
      %78 = vector.load %arg3[%c0_28, %c0_29] : memref<1x128xf32, #tpu.memory_space<vmem>>, vector<1x128xf32>
      %c0_30 = arith.constant 0 : index
      %c0_31 = arith.constant 0 : index
      %79 = vector.load %arg9[%c0_30, %c0_31] : memref<1x128xf32, #tpu.memory_space<vmem>>, vector<1x128xf32>
      tpu.vector_store %arg9[%c0_30, %c0_31], %78 {strides = array<i32>} : memref<1x128xf32, #tpu.memory_space<vmem>>, vector<1x128xf32>,
    } else {
    }
    %c0 = arith.constant 0 : index
    %c0_1 = arith.constant 0 : index
    %c0_2 = arith.constant 0 : index
    %3 = vector.load %arg2[%c0, %c0_1, %c0_2] : memref<1x1x128xbf16, #tpu.memory_space<vmem>>, vector<1x1x128xbf16>
    %4 = vector.shape_cast %3 : vector<1x1x128xbf16> to vector<1x128xbf16>
    %5 = arith.extf %4 : vector<1x128xbf16> to vector<1x128xf32>
    %c0_3 = arith.constant 0 : index
    %c0_4 = arith.constant 0 : index
    %6 = vector.load %arg9[%c0_3, %c0_4] : memref<1x128xf32, #tpu.memory_space<vmem>>, vector<1x128xf32>
    %c0_5 = arith.constant 0 : index
    %c0_6 = arith.constant 0 : index
    %7 = vector.load %arg4[%c0_5, %c0_6] : memref<128x384xbf16, #tpu.memory_space<vmem>>, vector<128x384xbf16>
    %c0_7 = arith.constant 0 : index
    %c0_8 = arith.constant 0 : index
    %8 = vector.load %arg5[%c0_7, %c0_8] : memref<128x384xbf16, #tpu.memory_space<vmem>>, vector<128x384xbf16>
    %c0_9 = arith.constant 0 : index
    %c0_10 = arith.constant 0 : index
    %9 = vector.load %arg6[%c0_9, %c0_10] : memref<1x384xf32, #tpu.memory_space<vmem>>, vector<1x384xf32>
    %c0_11 = arith.constant 0 : index
    %c0_12 = arith.constant 0 : index
    %10 = vector.load %arg7[%c0_11, %c0_12] : memref<1x128xf32, #tpu.memory_space<vmem>>, vector<1x128xf32>
    %c0_i32_13 = arith.constant 0 : i32
    %11 = arith.truncf %5 : vector<1x128xf32> to vector<1x128xbf16>
    %cst = arith.constant dense<0.000000e+00> : vector<1x384xf32>
    %12 = tpu.matmul %11, %7, %cst {dimension_numbers = #tpu.dot_dimension_numbers<[1], [0], [0], [1], [0, 0, 1, 1], [], []>} : vector<1x128xbf16>, vector<128x384xbf16>, vector<1x384xf32> -> vector<1x384xf32>
    %13 = arith.addf %12, %9 : vector<1x384xf32>
    %14 = arith.truncf %6 : vector<1x128xf32> to vector<1x128xbf16>
    %cst_14 = arith.constant dense<0.000000e+00> : vector<1x384xf32>
    %15 = tpu.matmul %14, %8, %cst_14 {dimension_numbers = #tpu.dot_dimension_numbers<[1], [0], [0], [1], [0, 0, 1, 1], [], []>} : vector<1x128xbf16>, vector<128x384xbf16>, vector<1x384xf32> -> vector<1x384xf32>
    %16 = vector.extract_strided_slice %13 {offsets = [0, 0], sizes = [1, 128], strides = [1, 1]} : vector<1x384xf32> to vector<1x128xf32>
    %17 = vector.extract_strided_slice %15 {offsets = [0, 0], sizes = [1, 128], strides = [1, 1]} : vector<1x384xf32> to vector<1x128xf32>
    %18 = arith.addf %16, %17 : vector<1x128xf32>
    %19 = arith.negf %18 : vector<1x128xf32>
    %20 = math.exp %19 : vector<1x128xf32>
    %cst_15 = arith.constant 1.000000e+00 : f32
    %21 = vector.broadcast %cst_15 : f32 to vector<1x128xf32>
    %22 = arith.addf %21, %20 : vector<1x128xf32>
    %23 = arith.divf %21, %22 : vector<1x128xf32>
    %24 = vector.extract_strided_slice %13 {offsets = [0, 128], sizes = [1, 128], strides = [1, 1]} : vector<1x384xf32> to vector<1x128xf32>
    %25 = vector.extract_strided_slice %15 {offsets = [0, 128], sizes = [1, 128], strides = [1, 1]} : vector<1x384xf32> to vector<1x128xf32>
    %26 = arith.addf %24, %25 : vector<1x128xf32>
    %27 = arith.negf %26 : vector<1x128xf32>
    %28 = math.exp %27 : vector<1x128xf32>
    %cst_16 = arith.constant 1.000000e+00 : f32
    %29 = vector.broadcast %cst_16 : f32 to vector<1x128xf32>
    %30 = arith.addf %29, %28 : vector<1x128xf32>
    %31 = arith.divf %29, %30 : vector<1x128xf32>
    %32 = vector.extract_strided_slice %13 {offsets = [0, 256], sizes = [1, 128], strides = [1, 1]} : vector<1x384xf32> to vector<1x128xf32>
    %33 = vector.extract_strided_slice %15 {offsets = [0, 256], sizes = [1, 128], strides = [1, 1]} : vector<1x384xf32> to vector<1x128xf32>
    %34 = arith.addf %33, %10 : vector<1x128xf32>
    %35 = arith.mulf %23, %34 : vector<1x128xf32>
    %36 = arith.addf %32, %35 : vector<1x128xf32>
    %37 = math.tanh %36 : vector<1x128xf32>
    %cst_17 = arith.constant 1.000000e+00 : f32
    %38 = vector.broadcast %cst_17 : f32 to vector<1x128xf32>
    %39 = arith.subf %38, %31 : vector<1x128xf32>
    %40 = arith.mulf %39, %37 : vector<1x128xf32>
    %41 = arith.mulf %31, %6 : vector<1x128xf32>
    %42 = arith.addf %40, %41 : vector<1x128xf32>
    %c1_i32 = arith.constant 1 : i32
    %43 = arith.truncf %42 : vector<1x128xf32> to vector<1x128xbf16>
    %cst_18 = arith.constant dense<0.000000e+00> : vector<1x384xf32>
    %44 = tpu.matmul %43, %7, %cst_18 {dimension_numbers = #tpu.dot_dimension_numbers<[1], [0], [0], [1], [0, 0, 1, 1], [], []>} : vector<1x128xbf16>, vector<128x384xbf16>, vector<1x384xf32> -> vector<1x384xf32>
    %45 = arith.addf %44, %9 : vector<1x384xf32>
    %46 = arith.truncf %42 : vector<1x128xf32> to vector<1x128xbf16>
    %cst_19 = arith.constant dense<0.000000e+00> : vector<1x384xf32>
    %47 = tpu.matmul %46, %8, %cst_19 {dimension_numbers = #tpu.dot_dimension_numbers<[1], [0], [0], [1], [0, 0, 1, 1], [], []>} : vector<1x128xbf16>, vector<128x384xbf16>, vector<1x384xf32> -> vector<1x384xf32>
    %48 = vector.extract_strided_slice %45 {offsets = [0, 0], sizes = [1, 128], strides = [1, 1]} : vector<1x384xf32> to vector<1x128xf32>
    %49 = vector.extract_strided_slice %47 {offsets = [0, 0], sizes = [1, 128], strides = [1, 1]} : vector<1x384xf32> to vector<1x128xf32>
    %50 = arith.addf %48, %49 : vector<1x128xf32>
    %51 = arith.negf %50 : vector<1x128xf32>
    %52 = math.exp %51 : vector<1x128xf32>
    %cst_20 = arith.constant 1.000000e+00 : f32
    %53 = vector.broadcast %cst_20 : f32 to vector<1x128xf32>
    %54 = arith.addf %53, %52 : vector<1x128xf32>
    %55 = arith.divf %53, %54 : vector<1x128xf32>
    %56 = vector.extract_strided_slice %45 {offsets = [0, 128], sizes = [1, 128], strides = [1, 1]} : vector<1x384xf32> to vector<1x128xf32>
    %57 = vector.extract_strided_slice %47 {offsets = [0, 128], sizes = [1, 128], strides = [1, 1]} : vector<1x384xf32> to vector<1x128xf32>
    %58 = arith.addf %56, %57 : vector<1x128xf32>
    %59 = arith.negf %58 : vector<1x128xf32>
    %60 = math.exp %59 : vector<1x128xf32>
    %cst_21 = arith.constant 1.000000e+00 : f32
    %61 = vector.broadcast %cst_21 : f32 to vector<1x128xf32>
    %62 = arith.addf %61, %60 : vector<1x128xf32>
    %63 = arith.divf %61, %62 : vector<1x128xf32>
    %64 = vector.extract_strided_slice %45 {offsets = [0, 256], sizes = [1, 128], strides = [1, 1]} : vector<1x384xf32> to vector<1x128xf32>
    %65 = vector.extract_strided_slice %47 {offsets = [0, 256], sizes = [1, 128], strides = [1, 1]} : vector<1x384xf32> to vector<1x128xf32>
    %66 = arith.addf %65, %10 : vector<1x128xf32>
    %67 = arith.mulf %55, %66 : vector<1x128xf32>
    %68 = arith.addf %64, %67 : vector<1x128xf32>
    %69 = math.tanh %68 : vector<1x128xf32>
    %cst_22 = arith.constant 1.000000e+00 : f32
    %70 = vector.broadcast %cst_22 : f32 to vector<1x128xf32>
    %71 = arith.subf %70, %63 : vector<1x128xf32>
    %72 = arith.mulf %71, %69 : vector<1x128xf32>
    %73 = arith.mulf %63, %42 : vector<1x128xf32>
    %74 = arith.addf %72, %73 : vector<1x128xf32>
    %c0_23 = arith.constant 0 : index
    %c0_24 = arith.constant 0 : index
    %75 = vector.load %arg9[%c0_23, %c0_24] : memref<1x128xf32, #tpu.memory_space<vmem>>, vector<1x128xf32>
    tpu.vector_store %arg9[%c0_23, %c0_24], %74 {strides = array<i32>} : memref<1x128xf32, #tpu.memory_space<vmem>>, vector<1x128xf32>,
    %76 = vector.shape_cast %74 : vector<1x128xf32> to vector<1x1x128xf32>
    %c0_25 = arith.constant 0 : index
    %c0_26 = arith.constant 0 : index
    %c0_27 = arith.constant 0 : index
    %77 = vector.load %arg8[%c0_25, %c0_26, %c0_27] : memref<1x1x128xf32, #tpu.memory_space<vmem>>, vector<1x1x128xf32>
    tpu.vector_store %arg8[%c0_25, %c0_26, %c0_27], %76 {strides = array<i32>} : memref<1x1x128xf32, #tpu.memory_space<vmem>>, vector<1x1x128xf32>,
    return
  }
  func.func @transform_0(%arg0: i32, %arg1: memref<5xi32, #tpu.memory_space<smem>>) -> (i32, i32, i32) {
    %0 = arith.index_cast %arg0 : i32 to index
    %1 = memref.load %arg1[%0] : memref<5xi32, #tpu.memory_space<smem>>
    %c0_i32 = arith.constant 0 : i32
    %c0_i32_0 = arith.constant 0 : i32
    %c0_i32_1 = arith.constant 0 : i32
    return %1, %c0_i32, %c0_i32_0 : i32, i32, i32
  }
  func.func @transform_1(%arg0: i32, %arg1: memref<5xi32, #tpu.memory_space<smem>>) -> (i32, i32) {
    %c0_i32 = arith.constant 0 : i32
    %c0_i32_0 = arith.constant 0 : i32
    %c0_i32_1 = arith.constant 0 : i32
    return %c0_i32, %c0_i32_0 : i32, i32
  }
  func.func @transform_2(%arg0: i32, %arg1: memref<5xi32, #tpu.memory_space<smem>>) -> (i32, i32) {
    %c0_i32 = arith.constant 0 : i32
    %c0_i32_0 = arith.constant 0 : i32
    %c0_i32_1 = arith.constant 0 : i32
    return %c0_i32, %c0_i32_0 : i32, i32
  }
  func.func @transform_3(%arg0: i32, %arg1: memref<5xi32, #tpu.memory_space<smem>>) -> (i32, i32) {
    %c0_i32 = arith.constant 0 : i32
    %c0_i32_0 = arith.constant 0 : i32
    %c0_i32_1 = arith.constant 0 : i32
    return %c0_i32, %c0_i32_0 : i32, i32
  }
  func.func @transform_4(%arg0: i32, %arg1: memref<5xi32, #tpu.memory_space<smem>>) -> (i32, i32) {
    %c0_i32 = arith.constant 0 : i32
    %c0_i32_0 = arith.constant 0 : i32
    %c0_i32_1 = arith.constant 0 : i32
    return %c0_i32, %c0_i32_0 : i32, i32
  }
  func.func @transform_5(%arg0: i32, %arg1: memref<5xi32, #tpu.memory_space<smem>>) -> (i32, i32) {
    %c0_i32 = arith.constant 0 : i32
    %c0_i32_0 = arith.constant 0 : i32
    %c0_i32_1 = arith.constant 0 : i32
    return %c0_i32, %c0_i32_0 : i32, i32
  }
  func.func @transform_6(%arg0: i32, %arg1: memref<5xi32, #tpu.memory_space<smem>>) -> (i32, i32, i32) {
    %c0_i32 = arith.constant 0 : i32
    %c0_i32_0 = arith.constant 0 : i32
    %c0_i32_1 = arith.constant 0 : i32
    return %arg0, %c0_i32, %c0_i32_0 : i32, i32, i32
  }
}

</mosaic_0001>

<bundles_post_ra>
// kernel: tpu_custom_call.1
= control target key start
LH: loop header
LB: loop body
LE: loop exit
PB: predicated region body
PF: predicated region fallthrough
CT: control target
= control target key end

     0   :  { %s2034_s0 = inlined_call_operand.vmem [shape: s32[5], index: 0, kind: input, shape index: {}]   ;;  %s2035_s1 = inlined_call_operand.vmem [shape: bf16[10,1,128], index: 1, kind: input, shape index: {}]   ;;  %s2036_s2 = inlined_call_operand.vmem [shape: f32[1,128], index: 2, kind: input, shape index: {}]   ;;  %s2037_s3 = inlined_call_operand.hbm [shape: bf16[128,384], index: 3, kind: input, shape index: {}]   ;;  %s2038_s4 = inlined_call_operand.hbm [shape: bf16[128,384], index: 4, kind: input, shape index: {}]   ;;  %s2039_s5 = inlined_call_operand.vmem [shape: f32[1,384], index: 5, kind: input, shape index: {}]   ;;  %s2040_s6 = inlined_call_operand.vmem [shape: f32[1,128], index: 6, kind: input, shape index: {}]   ;;  %s2041_s7 = inlined_call_operand.hbm [shape: f32[5,1,128], index: 7, kind: output, shape index: {}]  }
   0x1   :  { %s12_s26 = sshll.u32 %s2034_s0, 4  ;;  %s13_s26 = int_to_ptr.vmem [resolvable:$true] %s12_s26 }
   0x2   :  { %s1423_s27 = scalar_lea.vmem %s13_s26, 16  ;;  %p1428_p1 = scmp.lt.s32.totalorder %s13_s26, %s13_s26 }
   0x3   :  { %p1424_p0 = scmp.ne.s32.totalorder %s13_s26, %s1423_s27  ;;  %p1429_p2 = scmp.lt.s32.totalorder %s1423_s27, %s1423_s27 }
   0x5   :  { %p1430_p3 = por %p1429_p2, %p1428_p1 }
   0x7   :  { %p1431_p4 = pnand %p1430_p3, %p1424_p0 }
   0x9   :  { %1434 = shalt.err (!%p1431_p4)  }
   0xa   :  { %s1559_s28 = smov [#allocation4]  }
   0xb   :  { %15 = dma.vmem_to_smem %s13_s26, 16, %s1559_s28, [#allocation3] }
   0xc   :  { %1529 = dma.done.wait [#allocation3], 16 }
   0xd   :  { %1530 = vsyncadd [#allocation3], 4294967280 }
   0xe   :  { %17 = sfence }
   0xf   :  { %18 = vsyncpa [#allocation6], 0 }
  0x10   :  { %19 = vsyncpa [#allocation9], 0 }
  0x11   :  { %20 = vsyncpa [#allocation7], 0 }
  0x12   :  { %22 = vsyncpa [#allocation7 + $0x1], 0  ;;  %s1611_s29 = smov 0   ;;  %s1613_s0 = smov 0  }
  0x13   :  { %s1615_s30 = smov 0   ;;  %s1617_s8 = smov 0  }
  0x14 LB: > { %s1632_s9 = sadd.s32 4294967295, %s1557_s8   ;;  %s1093_s10 = sadd.s32 4294967294, %s1557_s8   ;;  %s1557_s8 = sphi %s1617_s8, %s2056_s8   ;;  %s1553_s30 = sphi %s1615_s30, %s2055_s30   ;;  %s1549_s0 = sphi %s1613_s0, %s2054_s0   ;;  %s1545_s29 = sphi %s1611_s29, %s2053_s29  }
  0x15   : > { %s1636_s11 = sadd.s32 1, %s1557_s8   ;;  %s168_s12 = sadd.s32 1, %s1553_s30 }
  0x16   : > { %s165_s13 = ssub.s32 %s1557_s8, %s1636_s11  ;;  %p178_p5 = scmp.ne.s32.totalorder %s1553_s30, %s1549_s0 }
  0x17   : > { %p166_p6 = scmp.eq.s32.totalorder %s165_s13, 0  ;;  %p179_p7 = scmp.eq.s32.totalorder %s1632_s9, 4 }
  0x18   : > { %p184_p8 = scmp.ne.s32.totalorder %s1549_s0, %s1545_s29  ;;  %p185_p9 = scmp.eq.s32.totalorder %s1093_s10, 4 }
  0x19   : > { %s1647_s14 = scalar_select %p166_p6, %s1553_s30, %s168_s12  }
  0x1a   : > { %p1649_p10 = por %p179_p7, %p178_p5  ;;  %p1653_p11 = por %p185_p9, %p184_p8 }
  0x1b   : > { %p1094_p12 = scmp.ge.s32.totalorder %s1557_s8, 1  ;;  %p192_p13 = scmp.lt.s32.totalorder %s1557_s8, 6 }
  0x1c   : > { %s2044_s16 = scalar_select %p1653_p11, 1, 0 }
  0x1d   : > { %p2042_p1 = scmp.eq.s32.totalorder %s1632_s9, 0  ;;  %p1661_p2 = pnand %p1094_p12, %p192_p13 }
  0x1e   : > { %s1560_s18 = smov [#allocation5]   ;;  %s1561_s21 = smov [#allocation8]  }
  0x1f   : > { %s207_s19 = sshll.u32 %s1560_s18, 4  ;;  %p1283_p3 = pneg %p1661_p2  ;;  %s208_s19 = int_to_ptr.vmem [resolvable:$true] %s207_s19 }
  0x20   : > { %s220_s22 = sshll.u32 %s1561_s21, 4  ;;  %s1446_s23 = scalar_lea.vmem %s208_s19, 3072  ;;  %s221_s22 = int_to_ptr.vmem [resolvable:$true] %s220_s22 }
  0x21   : > { %p1669_p4 = pnand %p2042_p1, %p1283_p3  ;;  %p1447_p6 = scmp.ne.s32.totalorder %s208_s19, %s1446_s23 }
  0x22   : > { %p1454_p9 = scmp.lt.s32.totalorder %s208_s19, %s208_s19  ;;  %p1455_p12 = scmp.lt.s32.totalorder %s1446_s23, %s1446_s23 }
  0x23   : > { %p1437_p5 = pneg %p1669_p4 }
  0x24   : > { %p1456_p13 = por %p1455_p12, %p1454_p9 }
  0x25   : > { %p1449_p7 = pnand %p1447_p6, %p1437_p5 }
  0x27   : > { %p1450_p8 = pneg %p1449_p7 }
  0x29   : > { %p1457_p3 = pnand %p1456_p13, %p1450_p8 }
  0x2b   : > { %1460 = shalt.err (!%p1457_p3)
}
  0x2c   : > { %s1562_s24 = smov 192   ;;  %s1563_s25 = smov 12  }
  0x2d   : > { %1286 = dma.hbm_to_vmem [thread:$0]  (!%p1669_p4), %s2037_s3, 3072, %s208_s19, [#allocation6], %s1562_s24, %s1562_s24, %s1563_s25  }
  0x2e   : > { %s1472_s28 = scalar_lea.vmem %s221_s22, 3072  ;;  %p1480_p1 = scmp.lt.s32.totalorder %s221_s22, %s221_s22 }
  0x2f   : > { %p1473_p0 = scmp.ne.s32.totalorder %s221_s22, %s1472_s28  ;;  %p1481_p11 = scmp.lt.s32.totalorder %s1472_s28, %s1472_s28 }
  0x31   : > { %p1475_p6 = pnand %p1473_p0, %p1437_p5  ;;  %p1482_p9 = por %p1481_p11, %p1480_p1 }
  0x33   : > { %p1476_p7 = pneg %p1475_p6 }
  0x35   : > { %p1483_p8 = pnand %p1482_p9, %p1476_p7 }
  0x37   : > { %1486 = shalt.err (!%p1483_p8)
}
  0x38   : > { %1289 = dma.hbm_to_vmem [thread:$0]  (!%p1669_p4), %s2038_s4, 3072, %s221_s22, [#allocation9], %s1562_s24, %s1562_s24, %s1563_s25  }
  0x39   : > { %250 = sbr.rel (%p1661_p2) target bundleno = 690 (0x2b2), region = 44  ;;  %p2047_p12 = scmp.eq.s32.totalorder (!%p1661_p2), %s1632_s9, 0 }
  0x3e   : > { %1532 = dma.done.wait (%p2047_p12), [#allocation6], 3072   ;;  %p2048_p0 = pmov %p2047_p12 }
  0x40   : > { %1534 = vsyncadd (%p2048_p0), [#allocation6], 4294964224  ;;  %p2049_p5 = pmov %p2048_p0 }
  0x41   : > { %p2050_p11 = pmov %p2048_p0 }
  0x42   : > { %1536 = dma.done.wait (%p2049_p5), [#allocation9], 3072  }
  0x43   : > { %1538 = vsyncadd (%p2050_p11), [#allocation9], 4294964224  ;;  %s280_s13 = sand.u32 1, %s1549_s0   ;;  %s282_s18 = sld [smem:[#allocation4 + %s1632_s9]] }
  0x44   : > { %s1711_s21 = scalar_lea.vmem [#allocation10], %s280_s13  ;;  %p2051_p2 = scmp.ne.s32.totalorder %s1632_s9, 0 }
  0x48   : > { %291 = sbr.rel (%p2051_p2) target bundleno = 79 (0x4f), region = 56 }
  0x49   : > { %p283_p1 = scmp.lt.s32.totalorder %s282_s18, 9 }
  0x4b   : > { %s2058_s18 = smov (!%p283_p1, %s282_s18), 9 }
  0x4c   : > { %s285_s20 = scalar_lea.vmem %s2035_s1, %s2058_s18 }
  0x4d   : > { %v292_v0 = vld [vmem:[%s2036_s2] sm:$0x1] }
  0x4e   : > { %293 = vst [vmem:[#allocation2] sm:$0x1] %v292_v0 }
  0x4f PF: > { %v1718_v1 = vld [vmem:[#allocation5 + $0xac] ss:$12 sps:$4 sm:$0xff]   ;;  %v1720_v2 = vld [vmem:[#allocation5 + $0xa8] ss:$12 sps:$4 sm:$0xff]   ;;  %v1564_v3 = vmov 0.0   ;;  %v1565_v4 = vmov 0   ;;  %v491_v61 = vlaneseq }
  0x50   : > { %1193 = vmatprep.subr.bf16.mxu1 %v1564_v3  ;;  %538 = vmatprep.mubr.bf16.mxu0 %v1565_v4  ;;  %v1725_v5 = vld [vmem:[#allocation5 + $0x94] ss:$12 sps:$4 sm:$0xff]   ;;  %vm1566_vm0 = vmmov 0   ;;  %v1730_v6 = vld [vmem:[#allocation5 + $0x90] ss:$12 sps:$4 sm:$0xff]   ;;  %s1154_s12 = sshll.u32 %s1632_s9, 4 }
  0x51   : > { %506 = vmatprep.subr.bf16.mxu0 %v1718_v1  ;;  %1209 = vmatprep.mubr.msk.bf16.mxu1 %vm1566_vm0, %v1564_v3  ;;  %v1733_v7 = vld [vmem:[#allocation5 + $0x7c] ss:$12 sps:$4 sm:$0xff]   ;;  %v1736_v8 = vld [vmem:[#allocation5 + $0x78] ss:$12 sps:$4 sm:$0xff]   ;;  %v1744_v11 = vld [vmem:[#allocation5 + $0x60] ss:$12 sps:$4 sm:$0xff]  }
  0x52   : > { %507 = vmatpush1.bf16.msra.mxu0 %v1720_v2  ;;  %v1739_v9 = vld [vmem:[#allocation5 + $0x64] ss:$12 sps:$4 sm:$0xff]   ;;  %v1747_v12 = vld [vmem:[#allocation5 + $0x4c] ss:$12 sps:$4 sm:$0xff]   ;;  %v1754_v14 = vld [vmem:[#allocation5 + $0x48] ss:$12 sps:$4 sm:$0xff]  }
  0x53   : > { %508 = vmatprep.subr.bf16.mxu0 %v1725_v5  ;;  %v1741_v10 = vld [vmem:[#allocation5 + $0xb0] ss:$12 sps:$4 sm:$0xff]   ;;  %v1750_v13 = vld [vmem:[#allocation5 + $0x98] ss:$12 sps:$4 sm:$0xff]   ;;  %v1757_v15 = vld [vmem:[#allocation5 + $0x34] ss:$12 sps:$4 sm:$0xff]  }
  0x54   : > { %1194 = vmatpush3.bf16.msra.mxu1 %v1741_v10  ;;  %v1760_v16 = vld [vmem:[#allocation5 + $0x80] ss:$12 sps:$4 sm:$0xff]   ;;  %v1763_v17 = vld [vmem:[#allocation5 + $0x30] ss:$12 sps:$4 sm:$0xff]   ;;  %v1770_v19 = vld [vmem:[#allocation5 + $0x68] ss:$12 sps:$4 sm:$0xff]  }
  0x55   : > { %1195 = vmatprep.subr.bf16.mxu1 %v1564_v3  ;;  %v1766_v18 = vld [vmem:[#allocation5 + $0x1c] ss:$12 sps:$4 sm:$0xff]   ;;  %v1774_v20 = vld [vmem:[#allocation5 + $0x18] ss:$12 sps:$4 sm:$0xff]   ;;  %v1783_v23 = vld [vmem:[#allocation5] ss:$12 sps:$4 sm:$0xff]  }
  0x56   : > { %509 = vmatpush1.bf16.msra.mxu0 %v1730_v6  ;;  %v1776_v21 = vld [vmem:[#allocation5 + $0x4] ss:$12 sps:$4 sm:$0xff]   ;;  %v1786_v24 = vld [vmem:[#allocation8 + $0xac] ss:$12 sps:$4 sm:$0xff]   ;;  %v294_v26 = vld [vmem:[%s285_s20] sm:$0x1]  ;;  %s1996_s20 = scalar_lea.hbm %s2041_s7, %s1154_s12 }
  0x57   : > { %510 = vmatprep.subr.bf16.mxu0 %v1733_v7  ;;  %v1780_v22 = vld [vmem:[#allocation5 + $0x50] ss:$12 sps:$4 sm:$0xff]   ;;  %v1790_v25 = vld [vmem:[#allocation5 + $0x38] ss:$12 sps:$4 sm:$0xff]   ;;  %v1799_v27 = vld [vmem:[#allocation8 + $0xa8] ss:$12 sps:$4 sm:$0xff]  }
  0x58   : > { %1196 = vmatpush3.bf16.msra.mxu1 %v1750_v13  ;;  %v1801_v28 = vld [vmem:[#allocation8 + $0x94] ss:$12 sps:$4 sm:$0xff]   ;;  %v1808_v30 = vld [vmem:[#allocation8 + $0x90] ss:$12 sps:$4 sm:$0xff]   ;;  %v1820_v33 = vld [vmem:[#allocation8 + $0x78] ss:$12 sps:$4 sm:$0xff]  }
  0x59   : > { %1197 = vmatprep.subr.bf16.mxu1 %v1564_v3  ;;  %v1805_v29 = vld [vmem:[#allocation5 + $0x20] ss:$12 sps:$4 sm:$0xff]   ;;  %v1811_v31 = vld [vmem:[#allocation8 + $0x7c] ss:$12 sps:$4 sm:$0xff]   ;;  %v1823_v34 = vld [vmem:[#allocation8 + $0x64] ss:$12 sps:$4 sm:$0xff]  }
  0x5a   : > { %511 = vmatpush1.bf16.msra.mxu0 %v1736_v8  ;;  %v1816_v32 = vld [vmem:[#allocation5 + $0x8] ss:$12 sps:$4 sm:$0xff]   ;;  %v1826_v35 = vld [vmem:[#allocation8 + $0xb0] ss:$12 sps:$4 sm:$0xff]   ;;  %v1830_v36 = vld [vmem:[#allocation8 + $0x60] ss:$12 sps:$4 sm:$0xff]  }
  0x5b   : > { %512 = vmatprep.subr.bf16.mxu0 %v1739_v9  ;;  %v1833_v37 = vld [vmem:[#allocation8 + $0x4c] ss:$12 sps:$4 sm:$0xff]   ;;  %v1842_v39 = vld [vmem:[#allocation8 + $0x48] ss:$12 sps:$4 sm:$0xff]   ;;  %v1852_v42 = vld [vmem:[#allocation8 + $0x30] ss:$12 sps:$4 sm:$0xff]  }
  0x5c   : > { %1198 = vmatpush3.bf16.msra.mxu1 %v1760_v16  ;;  %v1836_v38 = vld [vmem:[#allocation8 + $0x98] ss:$12 sps:$4 sm:$0xff]   ;;  %v1845_v40 = vld [vmem:[#allocation8 + $0x34] ss:$12 sps:$4 sm:$0xff]   ;;  %v1855_v43 = vld [vmem:[#allocation8 + $0x1c] ss:$12 sps:$4 sm:$0xff]  }
  0x5d   : > { %1199 = vmatprep.subr.bf16.mxu1 %v1564_v3  ;;  %v1848_v41 = vld [vmem:[#allocation8 + $0x80] ss:$12 sps:$4 sm:$0xff]   ;;  %v1858_v44 = vld [vmem:[#allocation8 + $0x68] ss:$12 sps:$4 sm:$0xff]   ;;  %v1862_v45 = vld [vmem:[#allocation8 + $0x18] ss:$12 sps:$4 sm:$0xff]  }
  0x5e   : > { %513 = vmatpush1.bf16.msra.mxu0 %v1744_v11  ;;  %v1865_v46 = vld [vmem:[#allocation8 + $0x4] ss:$12 sps:$4 sm:$0xff]   ;;  %v1872_v48 = vld [vmem:[#allocation8] ss:$12 sps:$4 sm:$0xff]   ;;  %v1874_v49 = vld [vmem:[#allocation2] sm:$0x1] }
  0x5f   : > { %514 = vmatprep.subr.bf16.mxu0 %v1747_v12  ;;  %v1868_v47 = vld [vmem:[#allocation8 + $0x50] ss:$12 sps:$4 sm:$0xff]   ;;  %v1878_v50 = vld [vmem:[#allocation8 + $0x38] ss:$12 sps:$4 sm:$0xff]   ;;  %v587_v51 = vpack.c.bf16 %v1874_v49, %v1874_v49  ;;  %v1885_v52 = vld [vmem:[#allocation8 + $0x20] ss:$12 sps:$4 sm:$0xff]  }
  0x60   : > { %1200 = vmatpush3.bf16.msra.mxu1 %v1770_v19  ;;  %v1892_v53 = vld [vmem:[#allocation8 + $0x8] ss:$12 sps:$4 sm:$0xff]   ;;  %v492_v63 = vshrl.u32 %v491_v61, 7  ;;  %s1019_s18 = sshll.u32 %s1711_s21, 4  ;;  %s1007_s22 = scalar_lea.sflag [#allocation7], %s280_s13  ;;  %s1020_s18 = int_to_ptr.vmem [resolvable:$true] %s1019_s18 }
  0x61   : > { %1201 = vmatprep.subr.bf16.mxu1 %v1564_v3  ;;  %s1487_s23 = scalar_lea.vmem %s1020_s18, 16  ;;  %s1567_s9 = smov [#allocation10]  }
  0x62   : > { %515 = vmatpush1.bf16.msra.mxu0 %v1754_v14  ;;  %v493_v0 = vsub.s32 0, %v492_v63  ;;  %p1488_p4 = scmp.ne.s32.totalorder %s1020_s18, %s1487_s23  ;;  %s1491_s24 = sshll.u32 %s1567_s9, 4  ;;  %s1492_s24 = int_to_ptr.vmem [resolvable:$false] %s1491_s24 }
  0x63   : > { %516 = vmatprep.subr.bf16.mxu0 %v1757_v15  ;;  %s1493_s25 = scalar_lea.vmem %s1492_s24, 32  ;;  %p1494_p6 = scmp.lt.s32.totalorder %s1020_s18, %s1492_s24 }
  0x64   : > { %1202 = vmatpush3.bf16.msra.mxu1 %v1780_v22  ;;  %p1489_p13 = pnand %p1488_p4, %p1649_p10  ;;  %p1495_p7 = scmp.lt.s32.totalorder %s1493_s25, %s1487_s23 }
  0x65   : > { %1203 = vmatprep.subr.bf16.mxu1 %v1564_v3 }
  0x66   : > { %517 = vmatpush1.bf16.msra.mxu0 %v1763_v17  ;;  %p1490_p3 = pneg %p1489_p13  ;;  %p1496_p9 = por %p1495_p7, %p1494_p6 }
  0x67   : > { %518 = vmatprep.subr.bf16.mxu0 %v1766_v18 }
  0x68   : > { %1204 = vmatpush3.bf16.msra.mxu1 %v1790_v25  ;;  %p1497_p8 = pnand %p1496_p9, %p1490_p3 }
  0x69   : > { %1205 = vmatprep.subr.bf16.mxu1 %v1564_v3 }
  0x6a   : > { %519 = vmatpush1.bf16.msra.mxu0 %v1774_v20 }
  0x6b   : > { %520 = vmatprep.subr.bf16.mxu0 %v1776_v21 }
  0x6c   : > { %1206 = vmatpush3.bf16.msra.mxu1 %v1805_v29 }
  0x6d   : > { %1207 = vmatprep.subr.bf16.mxu1 %v1564_v3 }
  0x6e   : > { %521 = vmatpush1.bf16.msra.mxu0 %v1783_v23 }
  0x6f   : > { %716 = vmatprep.subr.bf16.mxu0 %v1786_v24 }
  0x70   : > { %1208 = vmatpush3.bf16.msra.mxu1 %v1816_v32 }
  0x71   : > { %539 = vmatmul.mubr.bf16.vlgmr.msra.gmra.mxu0 %v294_v26  ;;  %1213 = vmatprep.subr.bf16.mxu1 %v1564_v3 }
  0x72   : > { %717 = vmatpush1.bf16.msra.mxu0 %v1799_v27  ;;  %748 = vmatprep.mubr.bf16.mxu0 %v1565_v4 }
  0x73   : > { %718 = vmatprep.subr.bf16.mxu0 %v1801_v28  ;;  %1210 = vmatmul.mubr.bf16.vlgmr.msra.gmra.mxu1 %v294_v26 }
  0x74   : > { %1214 = vmatpush3.bf16.msra.mxu1 %v1826_v35  ;;  %1229 = vmatprep.mubr.msk.bf16.mxu1 %vm1566_vm0, %v1564_v3 }
  0x75   : > { %1215 = vmatprep.subr.bf16.mxu1 %v1564_v3 }
  0x76   : > { %719 = vmatpush1.bf16.msra.mxu0 %v1808_v30 }
  0x77   : > { %720 = vmatprep.subr.bf16.mxu0 %v1811_v31 }
  0x78   : > { %1216 = vmatpush3.bf16.msra.mxu1 %v1836_v38 }
  0x79   : > { %1217 = vmatprep.subr.bf16.mxu1 %v1564_v3 }
  0x7a   : > { %721 = vmatpush1.bf16.msra.mxu0 %v1820_v33 }
  0x7b   : > { %722 = vmatprep.subr.bf16.mxu0 %v1823_v34 }
  0x7c   : > { %1218 = vmatpush3.bf16.msra.mxu1 %v1848_v41 }
  0x7d   : > { %1219 = vmatprep.subr.bf16.mxu1 %v1564_v3 }
  0x7e   : > { %723 = vmatpush1.bf16.msra.mxu0 %v1830_v36 }
  0x7f   : > { %724 = vmatprep.subr.bf16.mxu0 %v1833_v37 }
  0x80   : > { %1220 = vmatpush3.bf16.msra.mxu1 %v1858_v44 }
  0x81   : > { %1221 = vmatprep.subr.bf16.mxu1 %v1564_v3 }
  0x82   : > { %725 = vmatpush1.bf16.msra.mxu0 %v1842_v39 }
  0x83   : > { %726 = vmatprep.subr.bf16.mxu0 %v1845_v40 }
  0x84   : > { %1222 = vmatpush3.bf16.msra.mxu1 %v1868_v47 }
  0x85   : > { %1223 = vmatprep.subr.bf16.mxu1 %v1564_v3 }
  0x86   : > { %727 = vmatpush1.bf16.msra.mxu0 %v1852_v42 }
  0x87   : > { %728 = vmatprep.subr.bf16.mxu0 %v1855_v43 }
  0x88   : > { %1224 = vmatpush3.bf16.msra.mxu1 %v1878_v50 }
  0x89   : > { %1225 = vmatprep.subr.bf16.mxu1 %v1564_v3 }
  0x8a   : > { %729 = vmatpush1.bf16.msra.mxu0 %v1862_v45 }
  0x8b   : > { %730 = vmatprep.subr.bf16.mxu0 %v1865_v46 }
  0x8c   : > { %1226 = vmatpush3.bf16.msra.mxu1 %v1885_v52 }
  0x8d   : > { %1227 = vmatprep.subr.bf16.mxu1 %v1564_v3 }
  0x8e   : > { %731 = vmatpush1.bf16.msra.mxu0 %v1872_v48 }
  0x8f   : > { %820 = vmatprep.subr.bf16.mxu0 %v1718_v1  ;;  %v360_v1 = vld [vmem:[%s2039_s5] sm:$0x7] }
  0x90   : > { %1228 = vmatpush3.bf16.msra.mxu1 %v1892_v53 }
  0x91   : > { %749 = vmatmul.mubr.bf16.vlgmr.msra.gmra.mxu0 %v587_v51  ;;  %1233 = vmatprep.subr.bf16.mxu1 %v1564_v3 }
  0x92   : > { %821 = vmatpush1.bf16.msra.mxu0 %v1720_v2  ;;  %852 = vmatprep.mubr.bf16.mxu0 %v1565_v4  ;;  %v1933_v2 = vrot.slane %v360_v1, %v493_v0 }
  0x93   : > { %822 = vmatprep.subr.bf16.mxu0 %v1725_v5  ;;  %1230 = vmatmul.mubr.bf16.vlgmr.msra.gmra.mxu1 %v587_v51  ;;  %v497_v5 = vsub.s32 1, %v492_v63 }
  0x94   : > { %1234 = vmatpush3.bf16.msra.mxu1 %v1741_v10  ;;  %1249 = vmatprep.mubr.msk.bf16.mxu1 %vm1566_vm0, %v1564_v3 }
  0x95   : > { %1235 = vmatprep.subr.bf16.mxu1 %v1564_v3 }
  0x96   : > { %823 = vmatpush1.bf16.msra.mxu0 %v1730_v6 }
  0x97   : > { %824 = vmatprep.subr.bf16.mxu0 %v1733_v7 }
  0x98   : > { %1236 = vmatpush3.bf16.msra.mxu1 %v1750_v13 }
  0x99   : > { %1237 = vmatprep.subr.bf16.mxu1 %v1564_v3 }
  0x9a   : > { %825 = vmatpush1.bf16.msra.mxu0 %v1736_v8  ;;  %v1936_v8 = vrot.slane %v360_v1, %v497_v5 }
  0x9b   : > { %826 = vmatprep.subr.bf16.mxu0 %v1739_v9 }
  0x9c   : > { %1238 = vmatpush3.bf16.msra.mxu1 %v1760_v16 }
  0x9d   : > { %1239 = vmatprep.subr.bf16.mxu1 %v1564_v3 }
  0x9e   : > { %827 = vmatpush1.bf16.msra.mxu0 %v1744_v11 }
  0x9f   : > { %828 = vmatprep.subr.bf16.mxu0 %v1747_v12 }
  0xa0   : > { %1240 = vmatpush3.bf16.msra.mxu1 %v1770_v19 }
  0xa1   : > { %1241 = vmatprep.subr.bf16.mxu1 %v1564_v3 }
  0xa2   : > { %829 = vmatpush1.bf16.msra.mxu0 %v1754_v14 }
  0xa3   : > { %830 = vmatprep.subr.bf16.mxu0 %v1757_v15 }
  0xa4   : > { %1242 = vmatpush3.bf16.msra.mxu1 %v1780_v22 }
  0xa5   : > { %1243 = vmatprep.subr.bf16.mxu1 %v1564_v3 }
  0xa6   : > { %831 = vmatpush1.bf16.msra.mxu0 %v1763_v17 }
  0xa7   : > { %832 = vmatprep.subr.bf16.mxu0 %v1766_v18 }
  0xa8   : > { %1244 = vmatpush3.bf16.msra.mxu1 %v1790_v25  ;;  %v1942_v25 = vld [vmem:[%s2040_s6] sm:$0x1] }
  0xa9   : > { %1245 = vmatprep.subr.bf16.mxu1 %v1564_v3 }
  0xaa   : > { %833 = vmatpush1.bf16.msra.mxu0 %v1774_v20 }
  0xab   : > { %834 = vmatprep.subr.bf16.mxu0 %v1776_v21 }
  0xac   : > { %1246 = vmatpush3.bf16.msra.mxu1 %v1805_v29 }
  0xad   : > { %1247 = vmatprep.subr.bf16.mxu1 %v1564_v3 }
  0xae   : > { %835 = vmatpush1.bf16.msra.mxu0 %v1783_v23  ;;  %v501_v23 = vsub.s32 2, %v492_v63 }
  0xaf   : > { %901 = vmatprep.subr.bf16.mxu0 %v1786_v24 }
  0xb0   : > { %1248 = vmatpush3.bf16.msra.mxu1 %v1816_v32  ;;  %v1944_v26 = vrot.slane %v360_v1, %v501_v23 }
  0xb1   : > { %1253 = vmatprep.subr.bf16.mxu1 %v1564_v3 }
 0x131   : > { %v540_v54 = vpop.f32.mrf.mxu0 }
 0x132   : > { %v541_v6 = vadd.f32 %v540_v54, %v1933_v2 }
 0x133   : > { %v542_v55 = vpop.f32.mrf.mxu0  ;;  %v581_v58 = vpop.f32.mrf.mxu1 }
 0x134   : > { %v543_v13 = vadd.f32 %v542_v55, %v1936_v8  ;;  %v582_v54 = vadd.f32 %v581_v58, %v1944_v26 }
 0x135   : > { %v544_v56 = vpop.f32.mrf.mxu0  ;;  %v1211_v59 = vpop.f32.mrf.mxu1 }
 0x137   : > { %v545_v57 = vpop.f32.mrf.mxu0  ;;  %v584_v60 = vpop.f32.mrf.mxu1 }
 0x139   : > { %v1212_v62 = vpop.f32.mrf.mxu1 }
 0x151   : > { %v750_v7 = vpop.f32.mrf.mxu0 }
 0x152   : > { %v797_v9 = vadd.f32 %v750_v7, %v541_v6 }
 0x153   : > { %v752_v10 = vpop.f32.mrf.mxu0  ;;  %v791_v16 = vpop.f32.mrf.mxu1 }
 0x154   : > { %v1150_v11 = vmul.f32 -1.442695, %v797_v9  ;;  %v804_v15 = vadd.f32 %v752_v10, %v543_v13  ;;  %v811_v32 = vadd.f32 %v791_v16, %v1942_v25 }
 0x155   : > { %v754_v12 = vpop.f32.mrf.mxu0  ;;  %v1231_v18 = vpop.f32.mrf.mxu1 }
 0x156   : > { %1403 = vpow2.f32 %v1150_v11  ;;  %v1151_v17 = vmul.f32 -1.442695, %v804_v15 }
 0x157   : > { %v755_v14 = vpop.f32.mrf.mxu0  ;;  %v794_v19 = vpop.f32.mrf.mxu1 }
 0x158   : > { %1405 = vpow2.f32 %v1151_v17 }
 0x159   : > { %v1232_v20 = vpop.f32.mrf.mxu1 }
 0x163   : > { %v1404_v21 = vpop.eup %1403 }
 0x164   : > { %v801_v22 = vadd.f32 1.0, %v1404_v21 }
 0x165   : > { %v1406_v24 = vpop.eup %1405 }
 0x166   : > { %1407 = vrcp.f32 %v801_v22  ;;  %v808_v29 = vadd.f32 1.0, %v1406_v24 }
 0x168   : > { %1409 = vrcp.f32 %v808_v29 }
 0x173   : > { %v1408_v51 = vpop.eup %1407 }
 0x174   : > { %v812_v55 = vmul.f32 %v1408_v51, %v811_v32 }
 0x175   : > { %v1410_v57 = vpop.eup %1409 }
 0x176   : > { %v813_v56 = vadd.f32 %v812_v55, %v582_v54  ;;  %v815_v59 = vsub.f32 1.0, %v1410_v57  ;;  %v817_v62 = vmul.f32 %v1410_v57, %v1874_v49 }
 0x178   : > { %1411 = vtanh.f32 %v813_v56 }
 0x185   : > { %v1412_v60 = vpop.eup %1411 }
 0x186   : > { %v816_v61 = vmul.f32 %v1412_v60, %v815_v59 }
 0x188   : > { %v1949_v63 = vadd.f32 %v817_v62, %v816_v61 }
 0x18a   : > { %v819_v0 = vpack.c.bf16 %v1949_v63, %v1949_v63 }
 0x18c   : > { %853 = vmatmul.mubr.bf16.vlgmr.msra.gmra.mxu0 %v819_v0  ;;  %1250 = vmatmul.mubr.bf16.vlgmr.msra.gmra.mxu1 %v819_v0 }
 0x18d   : > { %902 = vmatpush1.bf16.msra.mxu0 %v1799_v27  ;;  %1254 = vmatpush3.bf16.msra.mxu1 %v1826_v35 }
 0x18e   : > { %903 = vmatprep.subr.bf16.mxu0 %v1801_v28  ;;  %1255 = vmatprep.subr.bf16.mxu1 %v1564_v3 }
 0x18f   : > { %933 = vmatprep.mubr.bf16.mxu0 %v1565_v4  ;;  %1269 = vmatprep.mubr.msk.bf16.mxu1 %vm1566_vm0, %v1564_v3 }
 0x191   : > { %904 = vmatpush1.bf16.msra.mxu0 %v1808_v30  ;;  %1256 = vmatpush3.bf16.msra.mxu1 %v1836_v38 }
 0x192   : > { %905 = vmatprep.subr.bf16.mxu0 %v1811_v31  ;;  %1257 = vmatprep.subr.bf16.mxu1 %v1564_v3 }
 0x195   : > { %906 = vmatpush1.bf16.msra.mxu0 %v1820_v33  ;;  %1258 = vmatpush3.bf16.msra.mxu1 %v1848_v41 }
 0x196   : > { %907 = vmatprep.subr.bf16.mxu0 %v1823_v34  ;;  %1259 = vmatprep.subr.bf16.mxu1 %v1564_v3 }
 0x199   : > { %908 = vmatpush1.bf16.msra.mxu0 %v1830_v36  ;;  %1260 = vmatpush3.bf16.msra.mxu1 %v1858_v44 }
 0x19a   : > { %909 = vmatprep.subr.bf16.mxu0 %v1833_v37  ;;  %1261 = vmatprep.subr.bf16.mxu1 %v1564_v3 }
 0x19d   : > { %910 = vmatpush1.bf16.msra.mxu0 %v1842_v39  ;;  %1262 = vmatpush3.bf16.msra.mxu1 %v1868_v47 }
 0x19e   : > { %911 = vmatprep.subr.bf16.mxu0 %v1845_v40  ;;  %1263 = vmatprep.subr.bf16.mxu1 %v1564_v3 }
 0x1a1   : > { %912 = vmatpush1.bf16.msra.mxu0 %v1852_v42  ;;  %1264 = vmatpush3.bf16.msra.mxu1 %v1878_v50 }
 0x1a2   : > { %913 = vmatprep.subr.bf16.mxu0 %v1855_v43  ;;  %1265 = vmatprep.subr.bf16.mxu1 %v1564_v3 }
 0x1a5   : > { %914 = vmatpush1.bf16.msra.mxu0 %v1862_v45  ;;  %1266 = vmatpush3.bf16.msra.mxu1 %v1885_v52 }
 0x1a6   : > { %915 = vmatprep.subr.bf16.mxu0 %v1865_v46  ;;  %1267 = vmatprep.subr.bf16.mxu1 %v1564_v3 }
 0x1a9   : > { %916 = vmatpush1.bf16.msra.mxu0 %v1872_v48  ;;  %1268 = vmatpush3.bf16.msra.mxu1 %v1892_v53 }
 0x1ac   : > { %934 = vmatmul.mubr.bf16.vlgmr.msra.gmra.mxu0 %v819_v0  ;;  %1270 = vmatmul.mubr.bf16.vlgmr.msra.gmra.mxu1 %v819_v0 }
 0x24c   : > { %v854_v4 = vpop.f32.mrf.mxu0  ;;  %v895_v27 = vpop.f32.mrf.mxu1 }
 0x24d   : > { %v855_v36 = vadd.f32 %v854_v4, %v1933_v2  ;;  %v896_v2 = vadd.f32 %v895_v27, %v1944_v26 }
 0x24e   : > { %v856_v28 = vpop.f32.mrf.mxu0  ;;  %v1251_v30 = vpop.f32.mrf.mxu1 }
 0x24f   : > { %v857_v44 = vadd.f32 %v856_v28, %v1936_v8 }
 0x250   : > { %v858_v31 = vpop.f32.mrf.mxu0  ;;  %v898_v33 = vpop.f32.mrf.mxu1 }
 0x252   : > { %v859_v34 = vpop.f32.mrf.mxu0  ;;  %v1252_v35 = vpop.f32.mrf.mxu1 }
 0x26c   : > { %v935_v37 = vpop.f32.mrf.mxu0  ;;  %v976_v38 = vpop.f32.mrf.mxu1 }
 0x26d   : > { %v982_v39 = vadd.f32 %v935_v37, %v855_v36  ;;  %v996_v58 = vadd.f32 %v976_v38, %v1942_v25 }
 0x26e   : > { %v937_v3 = vpop.f32.mrf.mxu0  ;;  %v1271_v40 = vpop.f32.mrf.mxu1 }
 0x26f   : > { %v1152_v41 = vmul.f32 -1.442695, %v982_v39  ;;  %v989_v47 = vadd.f32 %v937_v3, %v857_v44 }
 0x270   : > { %v939_v42 = vpop.f32.mrf.mxu0  ;;  %v979_v43 = vpop.f32.mrf.mxu1 }
 0x271   : > { %1413 = vpow2.f32 %v1152_v41  ;;  %v1153_v48 = vmul.f32 -1.442695, %v989_v47 }
 0x272   : > { %v940_v45 = vpop.f32.mrf.mxu0  ;;  %v1272_v46 = vpop.f32.mrf.mxu1 }
 0x273   : > { %1415 = vpow2.f32 %v1153_v48 }
 0x27e   : > { %v1414_v49 = vpop.eup %1413 }
 0x27f   : > { %v986_v50 = vadd.f32 1.0, %v1414_v49 }
 0x280   : > { %v1416_v52 = vpop.eup %1415 }
 0x281   : > { %1417 = vrcp.f32 %v986_v50  ;;  %v993_v53 = vadd.f32 1.0, %v1416_v52 }
 0x283   : > { %1419 = vrcp.f32 %v993_v53 }
 0x28e   : > { %v1418_v1 = vpop.eup %1417 }
 0x28f   : > { %v997_v5 = vmul.f32 %v1418_v1, %v996_v58 }
 0x290   : > { %v1420_v7 = vpop.eup %1419 }
 0x291   : > { %v998_v6 = vadd.f32 %v997_v5, %v896_v2  ;;  %v1000_v8 = vsub.f32 1.0, %v1420_v7  ;;  %v1002_v11 = vmul.f32 %v1420_v7, %v1949_v63 }
 0x293   : > { %1421 = vtanh.f32 %v998_v6 }
 0x2a0   : > { %v1422_v9 = vpop.eup %1421 }
 0x2a1   : > { %v1001_v10 = vmul.f32 %v1422_v9, %v1000_v8 }
 0x2a3   : > { %v1003_v12 = vadd.f32 %v1002_v11, %v1001_v10 }
 0x2a5   : > { %1004 = vst [vmem:[#allocation2] sm:$0x1] %v1003_v12  ;;  %1005 = vst [vmem:[%s1711_s21] sm:$0x1] %v1003_v12 }
 0x2a6   : > { %1500 = shalt.err (!%p1497_p8)
}
 0x2a7   : > { %s1501_s21 = scalar_lea.hbm %s1996_s20, 16  ;;  %s1505_s27 = scalar_lea.hbm %s2041_s7, 80 }
 0x2a8   : > { %p1502_p12 = scmp.ne.s32.totalorder %s1996_s20, %s1501_s21  ;;  %p1506_p11 = scmp.lt.s32.totalorder %s1996_s20, %s2041_s7 }
 0x2a9   : > { %p1507_p1 = scmp.lt.s32.totalorder %s1505_s27, %s1501_s21 }
 0x2aa   : > { %p1503_p0 = pnand %p1502_p12, %p1649_p10 }
 0x2ab   : > { %p1508_p2 = por %p1507_p1, %p1506_p11 }
 0x2ac   : > { %p1504_p5 = pneg %p1503_p0 }
 0x2ae   : > { %p1509_p4 = pnand %p1508_p2, %p1504_p5 }
 0x2b0   : > { %1512 = shalt.err (!%p1509_p4)
}
 0x2b1   : > { %1281 = dma.vmem_to_hbm [thread:$0]  (%p1649_p10), %s1020_s18, 16, %s1996_s20, %s1007_s22  }
 0x2b2 PF: > { %p1298_p13 = scmp.ge.s32.totalorder %s1557_s8, 2  ;;  %s1031_s12 = sand.u32 1, %s1545_s29  }
 0x2b3   : > { %p2052_p3 = scmp.ne.s32.totalorder %s2044_s16, 0  ;;  %s1032_s17 = scalar_lea.sflag [#allocation7], %s1031_s12 }
 0x2b5   : > { %p1291_p6 = pnand %p1298_p13, %p2052_p3 }
 0x2b7   : > { %p1292_p7 = pneg %p1291_p6 }
 0x2b9   : > { %1540 = dma.done.wait (%p1292_p7), %s1032_s17, 16  }
 0x2ba   : > { %1542 = vsyncadd (%p1292_p7), %s1032_s17, 4294967280  ;;  %p25_p9 = scmp.ge.s32.totalorder %s1636_s11, 7   ;;  %s2053_s29 = smov %s1549_s0 }
 0x2bb   : > { %s2054_s0 = smov %s1553_s30  ;;  %s2055_s30 = smov %s1647_s14 }
 0x2bc   : > { %s2056_s8 = smov %s1636_s11  ;;  %27 = sbr.rel (!%p25_p9) target bundleno = 20 (0x14), region = 92 }
 0x2c1   :  { %1036 = vsyncpa [#allocation6], 1 }
 0x2c2   :  { %1038 = vsyncpa [#allocation6 + $0x1], 1 }
 0x2c3   :  { %1039 = vsyncpa [#allocation9], 1 }
 0x2c4   :  { %1040 = vsyncpa [#allocation7], 1 }
 0x2c5   :  { %1042 = vsyncpa [#allocation7 + $0x1], 1 }

</bundles_post_ra>
